<compile_context>
chip_gen: v7x
topology: tpu7x:2x2x1
jax: 0.10.0
libtpu: 0.0.40
codegen_flags: <defaults>
</compile_context>

<pallas_src>
import jax
import jax.numpy as jnp
from jax.experimental import pallas as pl
from jax.experimental.pallas import tpu as pltpu

D_IN, D_H1, D_H2, D_LAT = 1024, 128, 64, 32


def _ae_kernel(x_ref, w1_ref, b1_ref, w2_ref, w3_ref,
               w4_ref, w5_ref, w6_ref, b6_ref,
               enc_ref, dec_ref):
    x = x_ref[...]                                                     # (TB, 1024)

    # ----- encoder -----
    h = jnp.dot(x, w1_ref[...], preferred_element_type=jnp.float32) + b1_ref[...]
    h = jnp.maximum(h, 0.0)                                            # ReLU
    h = jnp.maximum(jnp.dot(h, w2_ref[...], preferred_element_type=jnp.float32), 0.0)
    enc = jnp.maximum(jnp.dot(h, w3_ref[...], preferred_element_type=jnp.float32), 0.0)

    # ----- decoder -----
    # nn.LeakyReLU(True) -> negative_slope = 1.0 -> identity (kept exactly).
    d = jnp.dot(enc, w4_ref[...], preferred_element_type=jnp.float32)
    d = jnp.dot(d, w5_ref[...], preferred_element_type=jnp.float32)
    logits = jnp.dot(d, w6_ref[...], preferred_element_type=jnp.float32) + b6_ref[...]
    dec = jax.nn.sigmoid(logits)                                       # EUP exp

    enc_ref[...] = enc.astype(enc_ref.dtype)
    dec_ref[...] = dec.astype(dec_ref.dtype)


def ae_forward(x, params, *, max_rows_per_block=256):
    """Pallas equivalent of AE.forward: returns (encoded, decoded)."""
    w1, b1, w2, w3, w4, w5, w6, b6 = params
    b, d_in = x.shape
    assert d_in == D_IN

    # Sublane-align the batch and pick the largest block that fits comfortably
    # in VMEM (weights ~1.1 MiB resident; per step ~2 * TB * 8 KiB double-buffered).
    b_pad = max(8, ((b + 7) // 8) * 8)
    tb = min(max_rows_per_block, b_pad)
    b_pad = ((b_pad + tb - 1) // tb) * tb
    if b_pad != b:
        x = jnp.pad(x, ((0, b_pad - b), (0, 0)))

    grid = (b_pad // tb,)

    def resident(shape):
        # Weight/bias blocks: whole array, same block every grid step (no re-DMA).
        return pl.BlockSpec(shape, lambda i: (0,) * len(shape))

    enc, dec = pl.pallas_call(
        _ae_kernel,
        out_shape=(
            jax.ShapeDtypeStruct((b_pad, D_LAT), x.dtype),
            jax.ShapeDtypeStruct((b_pad, D_IN), x.dtype),
        ),
        grid_spec=pltpu.PrefetchScalarGridSpec(
            num_scalar_prefetch=0,
            grid=grid,
            in_specs=[
                pl.BlockSpec((tb, D_IN), lambda i: (i, 0)),   # x batch block
                resident((D_IN, D_H1)),                       # w1
                resident((1, D_H1)),                          # b1
                resident((D_H1, D_H2)),                       # w2
                resident((D_H2, D_LAT)),                      # w3
                resident((D_LAT, D_H2)),                      # w4
                resident((D_H2, D_H1)),                       # w5
                resident((D_H1, D_IN)),                       # w6
                resident((1, D_IN)),                          # b6
            ],
            out_specs=[
                pl.BlockSpec((tb, D_LAT), lambda i: (i, 0)),  # encoded
                pl.BlockSpec((tb, D_IN), lambda i: (i, 0)),   # decoded (lane-dense)
            ],
        ),
        compiler_params=pltpu.CompilerParams(
            dimension_semantics=("parallel",),
        ),
    )(x, w1, b1, w2, w3, w4, w5, w6, b6)

    return enc[:b], dec[:b]


def init_ae_params(key, dtype=jnp.float32):
    """PyTorch-style uniform(+-1/sqrt(fan_in)) init; weights stored as (in, out)."""
    ks = jax.random.split(key, 8)

    def lin(k, fan_in, fan_out):
        bound = 1.0 / float(fan_in) ** 0.5
        return jax.random.uniform(k, (fan_in, fan_out), dtype, -bound, bound)

    w1 = lin(ks[0], D_IN, D_H1)
    b1 = jax.random.uniform(ks[1], (1, D_H1), dtype,
                            -1.0 / float(D_IN) ** 0.5, 1.0 / float(D_IN) ** 0.5)
    w2 = lin(ks[2], D_H1, D_H2)
    w3 = lin(ks[3], D_H2, D_LAT)
    w4 = lin(ks[4], D_LAT, D_H2)
    w5 = lin(ks[5], D_H2, D_H1)
    w6 = lin(ks[6], D_H1, D_IN)
    b6 = jax.random.uniform(ks[7], (1, D_IN), dtype,
                            -1.0 / float(D_H1) ** 0.5, 1.0 / float(D_H1) ** 0.5)
    return (w1, b1, w2, w3, w4, w5, w6, b6)


def ae_reference(x, params):
    """Pure-JAX reference matching PyTorch AE.forward semantics."""
    w1, b1, w2, w3, w4, w5, w6, b6 = params
    h = jnp.maximum(x @ w1 + b1, 0.0)
    h = jnp.maximum(h @ w2, 0.0)
    enc = jnp.maximum(h @ w3, 0.0)
    d = enc @ w4        # LeakyReLU(negative_slope=1.0) == identity
    d = d @ w5          # LeakyReLU(negative_slope=1.0) == identity
    dec = jax.nn.sigmoid(d @ w6 + b6)
    return enc, dec


if __name__ == "__main__":
    key = jax.random.PRNGKey(0)
    pkey, xkey = jax.random.split(key)

    params = init_ae_params(pkey)
    x = jax.random.normal(xkey, (8, D_IN), dtype=jnp.float32)  # small batch, 1024 features

    enc, dec = ae_forward(x, params)
    enc, dec = jax.block_until_ready((enc, dec))

    assert enc.shape == (8, D_LAT), enc.shape
    assert dec.shape == (8, D_IN), dec.shape

    enc_ref, dec_ref = ae_reference(x, params)
    assert jnp.allclose(enc, enc_ref, atol=2e-3, rtol=2e-3), \
        float(jnp.max(jnp.abs(enc - enc_ref)))
    assert jnp.allclose(dec, dec_ref, atol=2e-3, rtol=2e-3), \
        float(jnp.max(jnp.abs(dec - dec_ref)))

    print("KERNEL_OK")
</pallas_src>

<mosaic_0001>
module attributes {stable_mosaic.version = 11 : i64} {
  func.func @_ae_kernel(%arg0: i32, %arg1: memref<8x1024xf32, #tpu.memory_space<vmem>>, %arg2: memref<1024x128xf32, #tpu.memory_space<vmem>>, %arg3: memref<1x128xf32, #tpu.memory_space<vmem>>, %arg4: memref<128x64xf32, #tpu.memory_space<vmem>>, %arg5: memref<64x32xf32, #tpu.memory_space<vmem>>, %arg6: memref<32x64xf32, #tpu.memory_space<vmem>>, %arg7: memref<64x128xf32, #tpu.memory_space<vmem>>, %arg8: memref<128x1024xf32, #tpu.memory_space<vmem>>, %arg9: memref<1x1024xf32, #tpu.memory_space<vmem>>, %arg10: memref<8x32xf32, #tpu.memory_space<vmem>>, %arg11: memref<8x1024xf32, #tpu.memory_space<vmem>>) attributes {dimension_semantics = [#tpu.dimension_semantics<parallel>], iteration_bounds = array<i64: 1>, scalar_prefetch = 0 : i64, scratch_operands = 0 : i64, tpu.core_type = #tpu.core_type<tc>, window_params = [{transform_indices = @transform_0, window_bounds = array<i64: 8, 1024>}, {pipeline_mode = #tpu.pipeline_mode<synchronous>, transform_indices = @transform_1, window_bounds = array<i64: 1024, 128>}, {pipeline_mode = #tpu.pipeline_mode<synchronous>, transform_indices = @transform_2, window_bounds = array<i64: 1, 128>}, {pipeline_mode = #tpu.pipeline_mode<synchronous>, transform_indices = @transform_3, window_bounds = array<i64: 128, 64>}, {pipeline_mode = #tpu.pipeline_mode<synchronous>, transform_indices = @transform_4, window_bounds = array<i64: 64, 32>}, {pipeline_mode = #tpu.pipeline_mode<synchronous>, transform_indices = @transform_5, window_bounds = array<i64: 32, 64>}, {pipeline_mode = #tpu.pipeline_mode<synchronous>, transform_indices = @transform_6, window_bounds = array<i64: 64, 128>}, {pipeline_mode = #tpu.pipeline_mode<synchronous>, transform_indices = @transform_7, window_bounds = array<i64: 128, 1024>}, {pipeline_mode = #tpu.pipeline_mode<synchronous>, transform_indices = @transform_8, window_bounds = array<i64: 1, 1024>}, {transform_indices = @transform_9, window_bounds = array<i64: 8, 32>}, {transform_indices = @transform_10, window_bounds = array<i64: 8, 1024>}]} {
    %c0 = arith.constant 0 : index
    %c0_0 = arith.constant 0 : index
    %0 = vector.load %arg1[%c0, %c0_0] : memref<8x1024xf32, #tpu.memory_space<vmem>>, vector<8x1024xf32>
    %c0_1 = arith.constant 0 : index
    %c0_2 = arith.constant 0 : index
    %1 = vector.load %arg2[%c0_1, %c0_2] : memref<1024x128xf32, #tpu.memory_space<vmem>>, vector<1024x128xf32>
    %cst = arith.constant dense<0.000000e+00> : vector<8x128xf32>
    %2 = tpu.matmul %0, %1, %cst {dimension_numbers = #tpu.dot_dimension_numbers<[1], [0], [0], [1], [0, 0, 1, 1], [], []>} : vector<8x1024xf32>, vector<1024x128xf32>, vector<8x128xf32> -> vector<8x128xf32>
    %c0_3 = arith.constant 0 : index
    %c0_4 = arith.constant 0 : index
    %3 = vector.load %arg3[%c0_3, %c0_4] : memref<1x128xf32, #tpu.memory_space<vmem>>, vector<1x128xf32>
    %4 = vector.broadcast %3 : vector<1x128xf32> to vector<8x128xf32>
    %5 = arith.addf %2, %4 : vector<8x128xf32>
    %cst_5 = arith.constant 0.000000e+00 : f32
    %6 = vector.broadcast %cst_5 : f32 to vector<8x128xf32>
    %7 = arith.maximumf %5, %6 : vector<8x128xf32>
    %c0_6 = arith.constant 0 : index
    %c0_7 = arith.constant 0 : index
    %8 = vector.load %arg4[%c0_6, %c0_7] : memref<128x64xf32, #tpu.memory_space<vmem>>, vector<128x64xf32>
    %cst_8 = arith.constant dense<0.000000e+00> : vector<8x64xf32>
    %9 = tpu.matmul %7, %8, %cst_8 {dimension_numbers = #tpu.dot_dimension_numbers<[1], [0], [0], [1], [0, 0, 1, 1], [], []>} : vector<8x128xf32>, vector<128x64xf32>, vector<8x64xf32> -> vector<8x64xf32>
    %cst_9 = arith.constant 0.000000e+00 : f32
    %10 = vector.broadcast %cst_9 : f32 to vector<8x64xf32>
    %11 = arith.maximumf %9, %10 : vector<8x64xf32>
    %c0_10 = arith.constant 0 : index
    %c0_11 = arith.constant 0 : index
    %12 = vector.load %arg5[%c0_10, %c0_11] : memref<64x32xf32, #tpu.memory_space<vmem>>, vector<64x32xf32>
    %cst_12 = arith.constant dense<0.000000e+00> : vector<8x32xf32>
    %13 = tpu.matmul %11, %12, %cst_12 {dimension_numbers = #tpu.dot_dimension_numbers<[1], [0], [0], [1], [0, 0, 1, 1], [], []>} : vector<8x64xf32>, vector<64x32xf32>, vector<8x32xf32> -> vector<8x32xf32>
    %cst_13 = arith.constant 0.000000e+00 : f32
    %14 = vector.broadcast %cst_13 : f32 to vector<8x32xf32>
    %15 = arith.maximumf %13, %14 : vector<8x32xf32>
    %c0_14 = arith.constant 0 : index
    %c0_15 = arith.constant 0 : index
    %16 = vector.load %arg6[%c0_14, %c0_15] : memref<32x64xf32, #tpu.memory_space<vmem>>, vector<32x64xf32>
    %cst_16 = arith.constant dense<0.000000e+00> : vector<8x64xf32>
    %17 = tpu.matmul %15, %16, %cst_16 {dimension_numbers = #tpu.dot_dimension_numbers<[1], [0], [0], [1], [0, 0, 1, 1], [], []>} : vector<8x32xf32>, vector<32x64xf32>, vector<8x64xf32> -> vector<8x64xf32>
    %c0_17 = arith.constant 0 : index
    %c0_18 = arith.constant 0 : index
    %18 = vector.load %arg7[%c0_17, %c0_18] : memref<64x128xf32, #tpu.memory_space<vmem>>, vector<64x128xf32>
    %cst_19 = arith.constant dense<0.000000e+00> : vector<8x128xf32>
    %19 = tpu.matmul %17, %18, %cst_19 {dimension_numbers = #tpu.dot_dimension_numbers<[1], [0], [0], [1], [0, 0, 1, 1], [], []>} : vector<8x64xf32>, vector<64x128xf32>, vector<8x128xf32> -> vector<8x128xf32>
    %c0_20 = arith.constant 0 : index
    %c0_21 = arith.constant 0 : index
    %20 = vector.load %arg8[%c0_20, %c0_21] : memref<128x1024xf32, #tpu.memory_space<vmem>>, vector<128x1024xf32>
    %cst_22 = arith.constant dense<0.000000e+00> : vector<8x1024xf32>
    %21 = tpu.matmul %19, %20, %cst_22 {dimension_numbers = #tpu.dot_dimension_numbers<[1], [0], [0], [1], [0, 0, 1, 1], [], []>} : vector<8x128xf32>, vector<128x1024xf32>, vector<8x1024xf32> -> vector<8x1024xf32>
    %c0_23 = arith.constant 0 : index
    %c0_24 = arith.constant 0 : index
    %22 = vector.load %arg9[%c0_23, %c0_24] : memref<1x1024xf32, #tpu.memory_space<vmem>>, vector<1x1024xf32>
    %23 = vector.broadcast %22 : vector<1x1024xf32> to vector<8x1024xf32>
    %24 = arith.addf %21, %23 : vector<8x1024xf32>
    %25 = arith.negf %24 : vector<8x1024xf32>
    %26 = math.exp %25 : vector<8x1024xf32>
    %cst_25 = arith.constant 1.000000e+00 : f32
    %27 = vector.broadcast %cst_25 : f32 to vector<8x1024xf32>
    %28 = arith.addf %27, %26 : vector<8x1024xf32>
    %29 = arith.divf %27, %28 : vector<8x1024xf32>
    %c0_26 = arith.constant 0 : index
    %c0_27 = arith.constant 0 : index
    %30 = vector.load %arg10[%c0_26, %c0_27] : memref<8x32xf32, #tpu.memory_space<vmem>>, vector<8x32xf32>
    tpu.vector_store %arg10[%c0_26, %c0_27], %15 {strides = array<i32>} : memref<8x32xf32, #tpu.memory_space<vmem>>, vector<8x32xf32>,
    %c0_28 = arith.constant 0 : index
    %c0_29 = arith.constant 0 : index
    %31 = vector.load %arg11[%c0_28, %c0_29] : memref<8x1024xf32, #tpu.memory_space<vmem>>, vector<8x1024xf32>
    tpu.vector_store %arg11[%c0_28, %c0_29], %29 {strides = array<i32>} : memref<8x1024xf32, #tpu.memory_space<vmem>>, vector<8x1024xf32>,
    return
  }
  func.func @transform_0(%arg0: i32) -> (i32, i32) {
    %c0_i32 = arith.constant 0 : i32
    %c0_i32_0 = arith.constant 0 : i32
    return %arg0, %c0_i32 : i32, i32
  }
  func.func @transform_1(%arg0: i32) -> (i32, i32) {
    %c0_i32 = arith.constant 0 : i32
    %c0_i32_0 = arith.constant 0 : i32
    %c0_i32_1 = arith.constant 0 : i32
    return %c0_i32, %c0_i32_0 : i32, i32
  }
  func.func @transform_2(%arg0: i32) -> (i32, i32) {
    %c0_i32 = arith.constant 0 : i32
    %c0_i32_0 = arith.constant 0 : i32
    %c0_i32_1 = arith.constant 0 : i32
    return %c0_i32, %c0_i32_0 : i32, i32
  }
  func.func @transform_3(%arg0: i32) -> (i32, i32) {
    %c0_i32 = arith.constant 0 : i32
    %c0_i32_0 = arith.constant 0 : i32
    %c0_i32_1 = arith.constant 0 : i32
    return %c0_i32, %c0_i32_0 : i32, i32
  }
  func.func @transform_4(%arg0: i32) -> (i32, i32) {
    %c0_i32 = arith.constant 0 : i32
    %c0_i32_0 = arith.constant 0 : i32
    %c0_i32_1 = arith.constant 0 : i32
    return %c0_i32, %c0_i32_0 : i32, i32
  }
  func.func @transform_5(%arg0: i32) -> (i32, i32) {
    %c0_i32 = arith.constant 0 : i32
    %c0_i32_0 = arith.constant 0 : i32
    %c0_i32_1 = arith.constant 0 : i32
    return %c0_i32, %c0_i32_0 : i32, i32
  }
  func.func @transform_6(%arg0: i32) -> (i32, i32) {
    %c0_i32 = arith.constant 0 : i32
    %c0_i32_0 = arith.constant 0 : i32
    %c0_i32_1 = arith.constant 0 : i32
    return %c0_i32, %c0_i32_0 : i32, i32
  }
  func.func @transform_7(%arg0: i32) -> (i32, i32) {
    %c0_i32 = arith.constant 0 : i32
    %c0_i32_0 = arith.constant 0 : i32
    %c0_i32_1 = arith.constant 0 : i32
    return %c0_i32, %c0_i32_0 : i32, i32
  }
  func.func @transform_8(%arg0: i32) -> (i32, i32) {
    %c0_i32 = arith.constant 0 : i32
    %c0_i32_0 = arith.constant 0 : i32
    %c0_i32_1 = arith.constant 0 : i32
    return %c0_i32, %c0_i32_0 : i32, i32
  }
  func.func @transform_9(%arg0: i32) -> (i32, i32) {
    %c0_i32 = arith.constant 0 : i32
    %c0_i32_0 = arith.constant 0 : i32
    return %arg0, %c0_i32 : i32, i32
  }
  func.func @transform_10(%arg0: i32) -> (i32, i32) {
    %c0_i32 = arith.constant 0 : i32
    %c0_i32_0 = arith.constant 0 : i32
    return %arg0, %c0_i32 : i32, i32
  }
}

</mosaic_0001>

<bundles_post_ra>
// kernel: tpu_custom_call.1
= control target key start
LH: loop header
LB: loop body
LE: loop exit
PB: predicated region body
PF: predicated region fallthrough
CT: control target
= control target key end

     0   :  { %16 = vsyncpa [#allocation3], 0  ;;  %s2373_s0 = inlined_call_operand.vmem [shape: f32[8,1024], index: 0, kind: input, shape index: {}]   ;;  %s2374_s1 = inlined_call_operand.hbm [shape: f32[1024,128], index: 1, kind: input, shape index: {}]   ;;  %s2375_s2 = inlined_call_operand.vmem [shape: f32[1,128], index: 2, kind: input, shape index: {}]   ;;  %s2376_s3 = inlined_call_operand.vmem [shape: f32[128,64], index: 3, kind: input, shape index: {}]   ;;  %s2377_s4 = inlined_call_operand.vmem [shape: f32[64,32], index: 4, kind: input, shape index: {}]   ;;  %s2378_s5 = inlined_call_operand.vmem [shape: f32[32,64], index: 5, kind: input, shape index: {}]   ;;  %s2379_s6 = inlined_call_operand.vmem [shape: f32[64,128], index: 6, kind: input, shape index: {}]   ;;  %s2380_s7 = inlined_call_operand.hbm [shape: f32[128,1024], index: 7, kind: input, shape index: {}]   ;;  %s2381_s8 = inlined_call_operand.vmem [shape: f32[1,1024], index: 8, kind: input, shape index: {}]   ;;  %s2382_s9 = inlined_call_operand.hbm [shape: f32[8,32], index: 9, kind: output, shape index: {0}]   ;;  %s2383_s10 = inlined_call_operand.hbm [shape: f32[8,1024], index: 10, kind: output, shape index: {1}]  }
   0x1   :  { %17 = vsyncpa [#allocation6], 0 }
   0x2   :  { %18 = vsyncpa [#allocation4], 0 }
   0x3   :  { %19 = vsyncpa [#allocation9], 0  ;;  %s2083_s13 = smov [#allocation2]   ;;  %s1987_s17 = scalar_lea.hbm %s2374_s1, 16384 }
   0x4   :  { %s27_s14 = sshll.u32 %s2083_s13, 4  ;;  %p1988_p0 = scmp.ne.s32.totalorder %s2374_s1, %s1987_s17  ;;  %s28_s14 = int_to_ptr.vmem [resolvable:$true] %s27_s14 }
   0x5   :  { %p1991_p1 = scmp.lt.u32.totalorder %s1987_s17, %s2374_s1 }
   0x7   :  { %p1993_p2 = pnand %p1991_p1, %p1988_p0 }
   0x9   :  { %1996 = shalt.err (!%p1993_p2)
}
   0xa   :  { %s1997_s22 = scalar_lea.vmem %s28_s14, 16384  ;;  %p2002_p4 = scmp.lt.s32.totalorder %s28_s14, %s28_s14 }
   0xb   :  { %p1998_p3 = scmp.ne.s32.totalorder %s28_s14, %s1997_s22  ;;  %p2003_p5 = scmp.lt.s32.totalorder %s1997_s22, %s1997_s22 }
   0xd   :  { %p2004_p6 = por %p2003_p5, %p2002_p4 }
   0xf   :  { %p2005_p7 = pnand %p2004_p6, %p1998_p3 }
  0x11   :  { %2008 = shalt.err (!%p2005_p7)
}
  0x12   :  { %s2084_s23 = smov 128   ;;  %s2085_s24 = smov 8  }
  0x13   :  { %33 = dma.hbm_to_vmem [thread:$0]  %s2374_s1, 16384, %s28_s14, [#allocation3], %s2084_s23, %s2084_s23, %s2085_s24  }
  0x14   :  { %s2086_s27 = smov [#allocation5]   ;;  %s2009_s11 = scalar_lea.hbm %s2380_s7, 16384 }
  0x15   :  { %s49_s28 = sshll.u32 %s2086_s27, 4  ;;  %p2010_p8 = scmp.ne.s32.totalorder %s2380_s7, %s2009_s11  ;;  %s50_s28 = int_to_ptr.vmem [resolvable:$true] %s49_s28 }
  0x16   :  { %p2013_p9 = scmp.lt.u32.totalorder %s2009_s11, %s2380_s7 }
  0x18   :  { %p2015_p10 = pnand %p2013_p9, %p2010_p8 }
  0x1a   :  { %2018 = shalt.err (!%p2015_p10)
}
  0x1b   :  { %s2019_s17 = scalar_lea.vmem %s50_s28, 16384  ;;  %p2024_p12 = scmp.lt.s32.totalorder %s50_s28, %s50_s28 }
  0x1c   :  { %p2020_p11 = scmp.ne.s32.totalorder %s50_s28, %s2019_s17  ;;  %p2025_p13 = scmp.lt.s32.totalorder %s2019_s17, %s2019_s17 }
  0x1e   :  { %p2026_p0 = por %p2025_p13, %p2024_p12 }
  0x20   :  { %p2027_p1 = pnand %p2026_p0, %p2020_p11 }
  0x22   :  { %2030 = shalt.err (!%p2027_p1)
}
  0x23   :  { %s2087_s1 = smov 1024   ;;  %s2088_s14 = smov 64  }
  0x24   :  { %55 = dma.hbm_to_vmem [thread:$0]  %s2380_s7, 16384, %s50_s28, [#allocation6], %s2087_s1, %s2087_s1, %s2088_s14  }
  0x25   :  { %2075 = dma.done.wait [#allocation3], 16384  }
  0x26   :  { %2076 = vsyncadd [#allocation3], 4294950912 }
  0x27   :  { %2077 = dma.done.wait [#allocation6], 16384  }
  0x28   :  { %2078 = vsyncadd [#allocation6], 4294950912  ;;  %v88_v0 = vld [vmem:[#allocation2 + $0x80] sm:$0xff]  ;;  %v89_v1 = vld [vmem:[#allocation2 + $0x88] sm:$0xff]  ;;  %vm2090_vm0 = vmmov 0   ;;  %vm583_vm1 = vcmask 523264  }
  0x29   :  { %v72_v2 = vld [vmem:[#allocation2] sm:$0xff]  ;;  %v1634_v3 = vpack.c.bf16 %v89_v1, %v88_v0  ;;  %v73_v4 = vld [vmem:[#allocation2 + $0x8] sm:$0xff]  ;;  %v90_v11 = vld [vmem:[#allocation2 + $0x90] sm:$0xff]  ;;  %vm662_vm2 = vcmask 261120  }
  0x2a   :  { %v120_v5 = vld [vmem:[#allocation2 + $0x180] sm:$0xff]  ;;  %v121_v6 = vld [vmem:[#allocation2 + $0x188] sm:$0xff]  ;;  %v1636_v7 = vpack.c.bf16 %v73_v4, %v72_v2  ;;  %v91_v13 = vld [vmem:[#allocation2 + $0x98] sm:$0xff] }
  0x2b   :  { %v1666_v8 = vpack.c.bf16 %v121_v6, %v120_v5  ;;  %v104_v9 = vld [vmem:[#allocation2 + $0x100] sm:$0xff]  ;;  %v105_v10 = vld [vmem:[#allocation2 + $0x108] sm:$0xff]  ;;  %1635 = vmatprep.subr.bf16.mxu0 %v1634_v3  ;;  %v74_v14 = vld [vmem:[#allocation2 + $0x10] sm:$0xff]  ;;  %v1638_v16 = vpack.c.bf16 %v91_v13, %v90_v11 }
  0x2c   :  { %v1668_v12 = vpack.c.bf16 %v105_v10, %v104_v9  ;;  %v75_v15 = vld [vmem:[#allocation2 + $0x18] sm:$0xff]  ;;  %1637 = vmatpush3.bf16.msra.mxu0 %v1636_v7  ;;  %v122_v18 = vld [vmem:[#allocation2 + $0x190] sm:$0xff]  ;;  %v92_v23 = vld [vmem:[#allocation2 + $0xa0] sm:$0xff] }
  0x2d   :  { %1667 = vmatprep.subr.bf16.mxu1 %v1666_v8  ;;  %v1640_v17 = vpack.c.bf16 %v75_v15, %v74_v14  ;;  %v123_v19 = vld [vmem:[#allocation2 + $0x198] sm:$0xff]  ;;  %v106_v20 = vld [vmem:[#allocation2 + $0x110] sm:$0xff]  ;;  %v93_v24 = vld [vmem:[#allocation2 + $0xa8] sm:$0xff]  ;;  %1639 = vmatprep.subr.bf16.mxu0 %v1638_v16 }
  0x2e   :  { %1669 = vmatpush3.bf16.msra.mxu1 %v1668_v12  ;;  %v1670_v21 = vpack.c.bf16 %v123_v19, %v122_v18  ;;  %v107_v22 = vld [vmem:[#allocation2 + $0x118] sm:$0xff]  ;;  %v1642_v26 = vpack.c.bf16 %v93_v24, %v92_v23  ;;  %v76_v27 = vld [vmem:[#allocation2 + $0x20] sm:$0xff]  ;;  %v77_v28 = vld [vmem:[#allocation2 + $0x28] sm:$0xff] }
  0x2f   :  { %v1672_v25 = vpack.c.bf16 %v107_v22, %v106_v20  ;;  %v124_v29 = vld [vmem:[#allocation2 + $0x1a0] sm:$0xff]  ;;  %v125_v30 = vld [vmem:[#allocation2 + $0x1a8] sm:$0xff]  ;;  %v1644_v33 = vpack.c.bf16 %v77_v28, %v76_v27  ;;  %v94_v35 = vld [vmem:[#allocation2 + $0xb0] sm:$0xff] }
  0x30   :  { %1671 = vmatprep.subr.bf16.mxu1 %v1670_v21  ;;  %v108_v31 = vld [vmem:[#allocation2 + $0x120] sm:$0xff]  ;;  %v109_v32 = vld [vmem:[#allocation2 + $0x128] sm:$0xff]  ;;  %1641 = vmatpush3.bf16.msra.mxu0 %v1640_v17  ;;  %v1674_v34 = vpack.c.bf16 %v125_v30, %v124_v29  ;;  %v95_v36 = vld [vmem:[#allocation2 + $0xb8] sm:$0xff] }
  0x31   :  { %v78_v37 = vld [vmem:[#allocation2 + $0x30] sm:$0xff]  ;;  %1643 = vmatprep.subr.bf16.mxu0 %v1642_v26  ;;  %v1676_v38 = vpack.c.bf16 %v109_v32, %v108_v31  ;;  %v1646_v39 = vpack.c.bf16 %v95_v36, %v94_v35  ;;  %v79_v40 = vld [vmem:[#allocation2 + $0x38] sm:$0xff]  ;;  %v96_v46 = vld [vmem:[#allocation2 + $0xc0] sm:$0xff] }
  0x32   :  { %1673 = vmatpush3.bf16.msra.mxu1 %v1672_v25  ;;  %v126_v41 = vld [vmem:[#allocation2 + $0x1b0] sm:$0xff]  ;;  %v127_v42 = vld [vmem:[#allocation2 + $0x1b8] sm:$0xff]  ;;  %v97_v47 = vld [vmem:[#allocation2 + $0xc8] sm:$0xff]  ;;  %v1648_v48 = vpack.c.bf16 %v79_v40, %v78_v37 }
  0x33   :  { %1675 = vmatprep.subr.bf16.mxu1 %v1674_v34  ;;  %v1678_v43 = vpack.c.bf16 %v127_v42, %v126_v41  ;;  %v110_v44 = vld [vmem:[#allocation2 + $0x130] sm:$0xff]  ;;  %v111_v45 = vld [vmem:[#allocation2 + $0x138] sm:$0xff]  ;;  %v128_v49 = vld [vmem:[#allocation2 + $0x1c0] sm:$0xff]  ;;  %v1650_v52 = vpack.c.bf16 %v97_v47, %v96_v46 }
  0x34   :  { %1645 = vmatpush3.bf16.msra.mxu0 %v1644_v33  ;;  %v129_v50 = vld [vmem:[#allocation2 + $0x1c8] sm:$0xff]  ;;  %v1680_v51 = vpack.c.bf16 %v111_v45, %v110_v44  ;;  %v80_v53 = vld [vmem:[#allocation2 + $0x40] sm:$0xff]  ;;  %v98_v58 = vld [vmem:[#allocation2 + $0xd0] sm:$0xff] }
  0x35   :  { %1647 = vmatprep.subr.bf16.mxu0 %v1646_v39  ;;  %v81_v54 = vld [vmem:[#allocation2 + $0x48] sm:$0xff]  ;;  %v112_v55 = vld [vmem:[#allocation2 + $0x140] sm:$0xff]  ;;  %v1682_v56 = vpack.c.bf16 %v129_v50, %v128_v49  ;;  %v99_v59 = vld [vmem:[#allocation2 + $0xd8] sm:$0xff] }
  0x36   :  { %1677 = vmatpush3.bf16.msra.mxu1 %v1676_v38  ;;  %v113_v57 = vld [vmem:[#allocation2 + $0x148] sm:$0xff]  ;;  %v130_v60 = vld [vmem:[#allocation2 + $0x1d0] sm:$0xff]  ;;  %v131_v61 = vld [vmem:[#allocation2 + $0x1d8] sm:$0xff]  ;;  %v1652_v62 = vpack.c.bf16 %v81_v54, %v80_v53  ;;  %v1654_v0 = vpack.c.bf16 %v99_v59, %v98_v58 }
  0x37   :  { %1679 = vmatprep.subr.bf16.mxu1 %v1678_v43  ;;  %v1684_v63 = vpack.c.bf16 %v113_v57, %v112_v55  ;;  %v82_v1 = vld [vmem:[#allocation2 + $0x50] sm:$0xff]  ;;  %v83_v2 = vld [vmem:[#allocation2 + $0x58] sm:$0xff]  ;;  %v1686_v4 = vpack.c.bf16 %v131_v61, %v130_v60  ;;  %v100_v6 = vld [vmem:[#allocation2 + $0xe0] sm:$0xff] }
  0x38   :  { %1649 = vmatpush3.bf16.msra.mxu0 %v1648_v48  ;;  %v114_v3 = vld [vmem:[#allocation2 + $0x150] sm:$0xff]  ;;  %v115_v5 = vld [vmem:[#allocation2 + $0x158] sm:$0xff]  ;;  %v101_v7 = vld [vmem:[#allocation2 + $0xe8] sm:$0xff]  ;;  %v1656_v10 = vpack.c.bf16 %v83_v2, %v82_v1 }
  0x39   :  { %1651 = vmatprep.subr.bf16.mxu0 %v1650_v52  ;;  %v132_v8 = vld [vmem:[#allocation2 + $0x1e0] sm:$0xff]  ;;  %v133_v9 = vld [vmem:[#allocation2 + $0x1e8] sm:$0xff]  ;;  %v1688_v13 = vpack.c.bf16 %v115_v5, %v114_v3  ;;  %v1658_v14 = vpack.c.bf16 %v101_v7, %v100_v6  ;;  %v102_v19 = vld [vmem:[#allocation2 + $0xf0] sm:$0xff] }
  0x3a   :  { %1681 = vmatpush3.bf16.msra.mxu1 %v1680_v51  ;;  %v84_v11 = vld [vmem:[#allocation2 + $0x60] sm:$0xff]  ;;  %v85_v12 = vld [vmem:[#allocation2 + $0x68] sm:$0xff]  ;;  %v1690_v18 = vpack.c.bf16 %v133_v9, %v132_v8  ;;  %v103_v20 = vld [vmem:[#allocation2 + $0xf8] sm:$0xff] }
  0x3b   :  { %1683 = vmatprep.subr.bf16.mxu1 %v1682_v56  ;;  %v116_v15 = vld [vmem:[#allocation2 + $0x160] sm:$0xff]  ;;  %v117_v16 = vld [vmem:[#allocation2 + $0x168] sm:$0xff]  ;;  %v67_v21 = vld [vmem:[%s2373_s0 + $0x18] sm:$0xff]  ;;  %v1660_v24 = vpack.c.bf16 %v85_v12, %v84_v11  ;;  %v1662_v26 = vpack.c.bf16 %v103_v20, %v102_v19 }
  0x3c   :  { %1653 = vmatpush3.bf16.msra.mxu0 %v1652_v62  ;;  %v65_v17 = vld [vmem:[%s2373_s0 + $0x8] sm:$0xff]  ;;  %v134_v22 = vld [vmem:[#allocation2 + $0x1f0] sm:$0xff]  ;;  %v135_v23 = vld [vmem:[#allocation2 + $0x1f8] sm:$0xff]  ;;  %341 = vmatprep.mubr.f32.mxu1 %v67_v21  ;;  %v1692_v25 = vpack.c.bf16 %v117_v16, %v116_v15 }
  0x3d   :  { %1655 = vmatprep.subr.bf16.mxu0 %v1654_v0  ;;  %271 = vmatprep.mubr.f32.mxu0 %v65_v17  ;;  %v86_v27 = vld [vmem:[#allocation2 + $0x70] sm:$0xff]  ;;  %v87_v28 = vld [vmem:[#allocation2 + $0x78] sm:$0xff]  ;;  %v1694_v30 = vpack.c.bf16 %v135_v23, %v134_v22  ;;  %v152_v32 = vld [vmem:[#allocation2 + $0x280] sm:$0xff] }
  0x3e   :  { %1685 = vmatpush3.bf16.msra.mxu1 %v1684_v63  ;;  %v118_v29 = vld [vmem:[#allocation2 + $0x170] sm:$0xff]  ;;  %v119_v31 = vld [vmem:[#allocation2 + $0x178] sm:$0xff]  ;;  %v153_v33 = vld [vmem:[#allocation2 + $0x288] sm:$0xff]  ;;  %v1664_v36 = vpack.c.bf16 %v87_v28, %v86_v27 }
  0x3f   :  { %1687 = vmatprep.subr.bf16.mxu1 %v1686_v4  ;;  %v184_v34 = vld [vmem:[#allocation2 + $0x380] sm:$0xff]  ;;  %v185_v35 = vld [vmem:[#allocation2 + $0x388] sm:$0xff]  ;;  %v1696_v37 = vpack.c.bf16 %v119_v31, %v118_v29  ;;  %v1698_v38 = vpack.c.bf16 %v153_v33, %v152_v32  ;;  %v154_v44 = vld [vmem:[#allocation2 + $0x290] sm:$0xff] }
  0x40   :  { %1657 = vmatpush3.bf16.msra.mxu0 %v1656_v10  ;;  %v136_v39 = vld [vmem:[#allocation2 + $0x200] sm:$0xff]  ;;  %v137_v40 = vld [vmem:[#allocation2 + $0x208] sm:$0xff]  ;;  %v1730_v42 = vpack.c.bf16 %v185_v35, %v184_v34  ;;  %v155_v45 = vld [vmem:[#allocation2 + $0x298] sm:$0xff] }
  0x41   :  { %1659 = vmatprep.subr.bf16.mxu0 %v1658_v14  ;;  %v168_v41 = vld [vmem:[#allocation2 + $0x300] sm:$0xff]  ;;  %v169_v43 = vld [vmem:[#allocation2 + $0x308] sm:$0xff]  ;;  %v186_v46 = vld [vmem:[#allocation2 + $0x390] sm:$0xff]  ;;  %v1700_v49 = vpack.c.bf16 %v137_v40, %v136_v39  ;;  %v1702_v52 = vpack.c.bf16 %v155_v45, %v154_v44 }
  0x42   :  { %1689 = vmatpush3.bf16.msra.mxu1 %v1688_v13  ;;  %v187_v47 = vld [vmem:[#allocation2 + $0x398] sm:$0xff]  ;;  %v64_v48 = vld [vmem:[%s2373_s0] sm:$0xff]  ;;  %v66_v50 = vld [vmem:[%s2373_s0 + $0x10] sm:$0xff]  ;;  %v1732_v51 = vpack.c.bf16 %v169_v43, %v168_v41 }
  0x43   :  { %1691 = vmatprep.subr.bf16.mxu1 %v1690_v18  ;;  %v138_v53 = vld [vmem:[#allocation2 + $0x210] sm:$0xff]  ;;  %v139_v54 = vld [vmem:[#allocation2 + $0x218] sm:$0xff]  ;;  %v1734_v56 = vpack.c.bf16 %v187_v47, %v186_v46  ;;  %v156_v58 = vld [vmem:[#allocation2 + $0x2a0] sm:$0xff] }
  0x44   :  { %1661 = vmatpush3.bf16.msra.mxu0 %v1660_v24  ;;  %v170_v55 = vld [vmem:[#allocation2 + $0x310] sm:$0xff]  ;;  %v171_v57 = vld [vmem:[#allocation2 + $0x318] sm:$0xff]  ;;  %v157_v59 = vld [vmem:[#allocation2 + $0x2a8] sm:$0xff]  ;;  %v1704_v62 = vpack.c.bf16 %v139_v54, %v138_v53 }
  0x45   :  { %1663 = vmatprep.subr.bf16.mxu0 %v1662_v26  ;;  %v188_v60 = vld [vmem:[#allocation2 + $0x3a0] sm:$0xff]  ;;  %v189_v61 = vld [vmem:[#allocation2 + $0x3a8] sm:$0xff]  ;;  %v1736_v63 = vpack.c.bf16 %v171_v57, %v170_v55  ;;  %v1706_v0 = vpack.c.bf16 %v157_v59, %v156_v58  ;;  %v158_v6 = vld [vmem:[#allocation2 + $0x2b0] sm:$0xff] }
  0x46   :  { %1693 = vmatpush3.bf16.msra.mxu1 %v1692_v25  ;;  %v140_v1 = vld [vmem:[#allocation2 + $0x220] sm:$0xff]  ;;  %v141_v2 = vld [vmem:[#allocation2 + $0x228] sm:$0xff]  ;;  %v1738_v4 = vpack.c.bf16 %v189_v61, %v188_v60  ;;  %v159_v7 = vld [vmem:[#allocation2 + $0x2b8] sm:$0xff] }
  0x47   :  { %1695 = vmatprep.subr.bf16.mxu1 %v1694_v30  ;;  %v172_v3 = vld [vmem:[#allocation2 + $0x320] sm:$0xff]  ;;  %v173_v5 = vld [vmem:[#allocation2 + $0x328] sm:$0xff]  ;;  %v190_v8 = vld [vmem:[#allocation2 + $0x3b0] sm:$0xff]  ;;  %v1708_v10 = vpack.c.bf16 %v141_v2, %v140_v1  ;;  %v1710_v12 = vpack.c.bf16 %v159_v7, %v158_v6 }
  0x48   :  { %1665 = vmatpush3.bf16.msra.mxu0 %v1664_v36  ;;  %v191_v9 = vld [vmem:[#allocation2 + $0x3b8] sm:$0xff]  ;;  %v1740_v11 = vpack.c.bf16 %v173_v5, %v172_v3  ;;  %v142_v13 = vld [vmem:[#allocation2 + $0x230] sm:$0xff]  ;;  %v160_v18 = vld [vmem:[#allocation2 + $0x2c0] sm:$0xff] }
  0x49   :  { %1699 = vmatprep.subr.bf16.mxu0 %v1698_v38  ;;  %v143_v14 = vld [vmem:[#allocation2 + $0x238] sm:$0xff]  ;;  %v174_v15 = vld [vmem:[#allocation2 + $0x330] sm:$0xff]  ;;  %v1742_v16 = vpack.c.bf16 %v191_v9, %v190_v8  ;;  %v161_v19 = vld [vmem:[#allocation2 + $0x2c8] sm:$0xff] }
  0x4a   :  { %1697 = vmatpush3.bf16.msra.mxu1 %v1696_v37  ;;  %v175_v17 = vld [vmem:[#allocation2 + $0x338] sm:$0xff]  ;;  %v192_v20 = vld [vmem:[#allocation2 + $0x3c0] sm:$0xff]  ;;  %v193_v21 = vld [vmem:[#allocation2 + $0x3c8] sm:$0xff]  ;;  %v1712_v22 = vpack.c.bf16 %v143_v14, %v142_v13  ;;  %v1714_v26 = vpack.c.bf16 %v161_v19, %v160_v18 }
  0x4b   :  { %1731 = vmatprep.subr.bf16.mxu1 %v1730_v42  ;;  %272 = vmatmul.mubr.f32.vlgmr.msra.gmra.mrb[0].mxu0 %v64_v48  ;;  %v69_v23 = vld [vmem:[%s2373_s0 + $0x28] sm:$0xff]  ;;  %v71_v24 = vld [vmem:[%s2373_s0 + $0x38] sm:$0xff]  ;;  %v1744_v25 = vpack.c.bf16 %v175_v17, %v174_v15  ;;  %v144_v27 = vld [vmem:[#allocation2 + $0x240] sm:$0xff]  ;;  %v1746_v30 = vpack.c.bf16 %v193_v21, %v192_v20 }
  0x4c   :  { %1701 = vmatpush3.bf16.msra.mxu0 %v1700_v49  ;;  %v145_v28 = vld [vmem:[#allocation2 + $0x248] sm:$0xff]  ;;  %v176_v29 = vld [vmem:[#allocation2 + $0x340] sm:$0xff]  ;;  %v162_v32 = vld [vmem:[#allocation2 + $0x2d0] sm:$0xff]  ;;  %411 = vmatprep.mubr.f32.mxu0 %v69_v23 }
  0x4d   :  { %342 = vmatmul.mubr.f32.vlgmr.msra.gmra.mrb[0].mxu1 %v66_v50  ;;  %1703 = vmatprep.subr.bf16.mxu0 %v1702_v52  ;;  %v177_v31 = vld [vmem:[#allocation2 + $0x348] sm:$0xff]  ;;  %v163_v33 = vld [vmem:[#allocation2 + $0x2d8] sm:$0xff]  ;;  %v194_v34 = vld [vmem:[#allocation2 + $0x3d0] sm:$0xff]  ;;  %v1716_v36 = vpack.c.bf16 %v145_v28, %v144_v27 }
  0x4e   :  { %1733 = vmatpush3.bf16.msra.mxu1 %v1732_v51  ;;  %v195_v35 = vld [vmem:[#allocation2 + $0x3d8] sm:$0xff]  ;;  %481 = vmatprep.mubr.f32.mxu1 %v71_v24  ;;  %v1748_v37 = vpack.c.bf16 %v177_v31, %v176_v29  ;;  %v1718_v38 = vpack.c.bf16 %v163_v33, %v162_v32  ;;  %v146_v39 = vld [vmem:[#allocation2 + $0x250] sm:$0xff]  ;;  %v164_v44 = vld [vmem:[#allocation2 + $0x2e0] sm:$0xff]  ;;  %v2091_v33 = vmov 0.0  }
  0x4f   :  { %1735 = vmatprep.subr.bf16.mxu1 %v1734_v56  ;;  %v147_v40 = vld [vmem:[#allocation2 + $0x258] sm:$0xff]  ;;  %v178_v41 = vld [vmem:[#allocation2 + $0x350] sm:$0xff]  ;;  %v1750_v42 = vpack.c.bf16 %v195_v35, %v194_v34  ;;  %v165_v45 = vld [vmem:[#allocation2 + $0x2e8] sm:$0xff] }
  0x50   :  { %1705 = vmatpush3.bf16.msra.mxu0 %v1704_v62  ;;  %v179_v43 = vld [vmem:[#allocation2 + $0x358] sm:$0xff]  ;;  %v196_v46 = vld [vmem:[#allocation2 + $0x3e0] sm:$0xff]  ;;  %v197_v47 = vld [vmem:[#allocation2 + $0x3e8] sm:$0xff]  ;;  %v1720_v48 = vpack.c.bf16 %v147_v40, %v146_v39  ;;  %v1722_v50 = vpack.c.bf16 %v165_v45, %v164_v44 }
  0x51   :  { %1707 = vmatprep.subr.bf16.mxu0 %v1706_v0  ;;  %v1752_v49 = vpack.c.bf16 %v179_v43, %v178_v41  ;;  %v148_v51 = vld [vmem:[#allocation2 + $0x260] sm:$0xff]  ;;  %v149_v52 = vld [vmem:[#allocation2 + $0x268] sm:$0xff]  ;;  %v1754_v54 = vpack.c.bf16 %v197_v47, %v196_v46  ;;  %v166_v56 = vld [vmem:[#allocation2 + $0x2f0] sm:$0xff] }
  0x52   :  { %1737 = vmatpush3.bf16.msra.mxu1 %v1736_v63  ;;  %v180_v53 = vld [vmem:[#allocation2 + $0x360] sm:$0xff]  ;;  %v181_v55 = vld [vmem:[#allocation2 + $0x368] sm:$0xff]  ;;  %v167_v57 = vld [vmem:[#allocation2 + $0x2f8] sm:$0xff]  ;;  %v1724_v60 = vpack.c.bf16 %v149_v52, %v148_v51 }
  0x53   :  { %1739 = vmatprep.subr.bf16.mxu1 %v1738_v4  ;;  %v198_v58 = vld [vmem:[#allocation2 + $0x3f0] sm:$0xff]  ;;  %v199_v59 = vld [vmem:[#allocation2 + $0x3f8] sm:$0xff]  ;;  %v1756_v61 = vpack.c.bf16 %v181_v55, %v180_v53  ;;  %v1726_v62 = vpack.c.bf16 %v167_v57, %v166_v56  ;;  %v68_v6 = vld [vmem:[%s2373_s0 + $0x20] sm:$0xff] }
  0x54   :  { %1709 = vmatpush3.bf16.msra.mxu0 %v1708_v10  ;;  %v150_v63 = vld [vmem:[#allocation2 + $0x270] sm:$0xff]  ;;  %v151_v0 = vld [vmem:[#allocation2 + $0x278] sm:$0xff]  ;;  %v1758_v1 = vpack.c.bf16 %v199_v59, %v198_v58  ;;  %v488_v8 = vld [vmem:[%s2376_s3] sm:$0xff] }
  0x55   :  { %1711 = vmatprep.subr.bf16.mxu0 %v1710_v12  ;;  %v182_v2 = vld [vmem:[#allocation2 + $0x370] sm:$0xff]  ;;  %v183_v3 = vld [vmem:[#allocation2 + $0x378] sm:$0xff]  ;;  %v1728_v4 = vpack.c.bf16 %v151_v0, %v150_v63  ;;  %v489_v9 = vld [vmem:[%s2376_s3 + $0x8] sm:$0xff] }
  0x56   :  { %1741 = vmatpush3.bf16.msra.mxu1 %v1740_v11  ;;  %v1760_v5 = vpack.c.bf16 %v183_v3, %v182_v2  ;;  %v70_v7 = vld [vmem:[%s2373_s0 + $0x30] sm:$0xff]  ;;  %v2089_v11 = vmov 0.0|0.0   ;;  %v1763_v12 = vpack.c.bf16 %v489_v9, %v488_v8  ;;  %v491_v13 = vld [vmem:[%s2376_s3 + $0x18] sm:$0xff]  ;;  %v492_v15 = vld [vmem:[%s2376_s3 + $0x20] sm:$0xff] }
  0x57   :  { %1743 = vmatprep.subr.bf16.mxu1 %v1742_v16  ;;  %v490_v10 = vld [vmem:[%s2376_s3 + $0x10] sm:$0xff]  ;;  %v493_v16 = vld [vmem:[%s2376_s3 + $0x28] sm:$0xff]  ;;  %v495_v19 = vld [vmem:[%s2376_s3 + $0x38] sm:$0xff] }
  0x58   :  { %1713 = vmatpush3.bf16.msra.mxu0 %v1712_v22  ;;  %v1766_v14 = vpack.c.bf16 %v491_v13, %v490_v10  ;;  %v1769_v17 = vpack.c.bf16 %v493_v16, %v492_v15  ;;  %v494_v18 = vld [vmem:[%s2376_s3 + $0x30] sm:$0xff]  ;;  %v496_v21 = vld [vmem:[%s2376_s3 + $0x40] sm:$0xff]  ;;  %v497_v22 = vld [vmem:[%s2376_s3 + $0x48] sm:$0xff] }
  0x59   :  { %1715 = vmatprep.subr.bf16.mxu0 %v1714_v26  ;;  %v1772_v20 = vpack.c.bf16 %v495_v19, %v494_v18  ;;  %v1775_v23 = vpack.c.bf16 %v497_v22, %v496_v21  ;;  %v498_v24 = vld [vmem:[%s2376_s3 + $0x50] sm:$0xff]  ;;  %v500_v27 = vld [vmem:[%s2376_s3 + $0x60] sm:$0xff]  ;;  %v501_v28 = vld [vmem:[%s2376_s3 + $0x68] sm:$0xff] }
  0x5a   :  { %1745 = vmatpush3.bf16.msra.mxu1 %v1744_v25  ;;  %v499_v25 = vld [vmem:[%s2376_s3 + $0x58] sm:$0xff]  ;;  %v1781_v29 = vpack.c.bf16 %v501_v28, %v500_v27  ;;  %v575_v34 = vld [vmem:[%s2377_s4] sm:$0xff]  ;;  %v576_v35 = vld [vmem:[%s2377_s4 + $0x8] sm:$0xff] }
  0x5b   :  { %1747 = vmatprep.subr.bf16.mxu1 %v1746_v30  ;;  %v1778_v26 = vpack.c.bf16 %v499_v25, %v498_v24  ;;  %v502_v30 = vld [vmem:[%s2376_s3 + $0x70] sm:$0xff]  ;;  %v503_v31 = vld [vmem:[%s2376_s3 + $0x78] sm:$0xff]  ;;  %v579_v40 = vld [vmem:[%s2377_s4 + $0x20] sm:$0xff] }
  0x5c   :  { %1717 = vmatpush3.bf16.msra.mxu0 %v1716_v36  ;;  %v1784_v32 = vpack.c.bf16 %v503_v31, %v502_v30  ;;  %v577_v36 = vld [vmem:[%s2377_s4 + $0x10] sm:$0xff]  ;;  %v580_v41 = vld [vmem:[%s2377_s4 + $0x28] sm:$0xff]  ;;  %v1358_v44 = vld [vmem:[%s2375_s2] ss:$0 sm:$0xff] }
  0x5d   :  { %1719 = vmatprep.subr.bf16.mxu0 %v1718_v38  ;;  %v578_v38 = vld [vmem:[%s2377_s4 + $0x18] sm:$0xff]  ;;  %v658_v0 = vld [vmem:[%s2378_s5] sm:$0xff]  ;;  %v737_v10 = vld [vmem:[%s2379_s6 + $0x8] sm:$0xff] }
  0x5e   :  { %1749 = vmatpush3.bf16.msra.mxu1 %v1748_v37  ;;  %v1787_v37 = vpack.c.bf16 %v576_v35, %v575_v34  ;;  %v1790_v39 = vpack.c.bf16 %v578_v38, %v577_v36  ;;  %v736_v9 = vld [vmem:[%s2379_s6] sm:$0xff]  ;;  %v738_v16 = vld [vmem:[%s2379_s6 + $0x10] sm:$0xff]  ;;  %v818_v25 = vld [vmem:[#allocation5 + $0x8] sm:$0xff] }
  0x5f   :  { %1751 = vmatprep.subr.bf16.mxu1 %v1750_v42  ;;  %v1793_v42 = vpack.c.bf16 %v580_v41, %v579_v40  ;;  %v1805_v13 = vpack.c.bf16 %v737_v10, %v736_v9  ;;  %v740_v19 = vld [vmem:[%s2379_s6 + $0x20] sm:$0xff]  ;;  %v742_v22 = vld [vmem:[%s2379_s6 + $0x30] sm:$0xff]  ;;  %v820_v27 = vld [vmem:[#allocation5 + $0x18] sm:$0xff] }
  0x60   :  { %1721 = vmatpush3.bf16.msra.mxu0 %v1720_v48  ;;  %v817_v30 = vld [vmem:[#allocation5] sm:$0xff]  ;;  %v834_v35 = vld [vmem:[#allocation5 + $0x88] sm:$0xff] }
  0x61   :  { %1723 = vmatprep.subr.bf16.mxu0 %v1722_v50  ;;  %v825_v31 = vld [vmem:[#allocation5 + $0x40] sm:$0xff]  ;;  %v842_v36 = vld [vmem:[#allocation5 + $0xc8] sm:$0xff] }
  0x62   :  { %1753 = vmatpush3.bf16.msra.mxu1 %v1752_v49  ;;  %v1818_v34 = vpack.c.bf16 %v825_v31, %v817_v30  ;;  %v833_v38 = vld [vmem:[#allocation5 + $0x80] sm:$0xff]  ;;  %v858_v41 = vld [vmem:[#allocation5 + $0x148] sm:$0xff]  ;;  %v876_v30 = vld [vmem:[#allocation5 + $0x1d8] sm:$0xff] }
  0x63   :  { %1755 = vmatprep.subr.bf16.mxu1 %v1754_v54  ;;  %v929_v9 = vld [vmem:[#allocation5 + $0x380] sm:$0xff] }
  0x64   :  { %1725 = vmatpush3.bf16.msra.mxu0 %v1724_v60  ;;  %v937_v10 = vld [vmem:[#allocation5 + $0x3c0] sm:$0xff] }
  0x65   :  { %1727 = vmatprep.subr.bf16.mxu0 %v1726_v62  ;;  %v582_v62 = vld [vmem:[%s2377_s4 + $0x38] sm:$0xff] }
  0x66   :  { %1757 = vmatpush3.bf16.msra.mxu1 %v1756_v61  ;;  %v581_v61 = vld [vmem:[%s2377_s4 + $0x30] sm:$0xff] }
  0x67   :  { %1759 = vmatprep.subr.bf16.mxu1 %v1758_v1  ;;  %v1796_v63 = vpack.c.bf16 %v582_v62, %v581_v61  ;;  %v659_v1 = vld [vmem:[%s2378_s5 + $0x8] sm:$0xff]  ;;  %v897_v61 = vld [vmem:[#allocation5 + $0x280] sm:$0xff] }
  0x68   :  { %1729 = vmatpush3.bf16.msra.mxu0 %v1728_v4  ;;  %v1799_v3 = vpack.c.bf16 %v659_v1, %v658_v0  ;;  %v905_v62 = vld [vmem:[#allocation5 + $0x2c0] sm:$0xff]  ;;  %v914_v0 = vld [vmem:[#allocation5 + $0x308] sm:$0xff] }
  0x69   :  { %1762 = vmatprep.subr.bf16.mxu0 %v2089_v11  ;;  %v922_v1 = vld [vmem:[#allocation5 + $0x348] sm:$0xff] }
  0x6a   :  { %1761 = vmatpush3.bf16.msra.mxu1 %v1760_v5 }
  0x6b   :  { %412 = vmatmul.mubr.f32.vlgmr.msra.gmra.mrb[2].mxu0 %v68_v6  ;;  %1786 = vmatprep.subr.bf16.mxu1 %v2089_v11  ;;  %v660_v6 = vld [vmem:[%s2378_s5 + $0x10] sm:$0xff] }
  0x6c   :  { %1764 = vmatpush3.bf16.msra.mxu0 %v1763_v12  ;;  %1582 = vmatprep.mubr.msk.f32.mxu0 %vm2090_vm0, %v2091_v33 }
  0x6d   :  { %482 = vmatmul.mubr.f32.vlgmr.msra.gmra.mrb[2].mxu1 %v70_v7  ;;  %1765 = vmatprep.subr.bf16.mxu0 %v2089_v11  ;;  %v661_v7 = vld [vmem:[%s2378_s5 + $0x18] sm:$0xff] }
  0x6e   :  { %1601 = vmatprep.mubr.msk.f32.mxu1 %vm2090_vm0, %v2091_v33  ;;  %1788 = vmatpush3.bf16.msra.mxu1 %v1787_v37  ;;  %v1802_v8 = vpack.c.bf16 %v661_v7, %v660_v6  ;;  %v1820_v37 = vpack.c.bf16 %v842_v36, %v834_v35  ;;  %v930_v6 = vld [vmem:[#allocation5 + $0x388] sm:$0xff]  ;;  %v875_v35 = vld [vmem:[#allocation5 + $0x1d0] sm:$0xff]  ;;  %v884_v36 = vld [vmem:[#allocation5 + $0x218] sm:$0xff] }
  0x6f   :  { %1789 = vmatprep.subr.bf16.mxu1 %v2089_v11  ;;  %v938_v7 = vld [vmem:[#allocation5 + $0x3c8] sm:$0xff] }
  0x70   :  { %1767 = vmatpush3.bf16.msra.mxu0 %v1766_v14 }
  0x71   :  { %1768 = vmatprep.subr.bf16.mxu0 %v2089_v11 }
  0x72   :  { %1791 = vmatpush3.bf16.msra.mxu1 %v1790_v39  ;;  %v841_v39 = vld [vmem:[#allocation5 + $0xc0] sm:$0xff] }
  0x73   :  { %1792 = vmatprep.subr.bf16.mxu1 %v2089_v11  ;;  %v1822_v40 = vpack.c.bf16 %v841_v39, %v833_v38 }
  0x74   :  { %1770 = vmatpush3.bf16.msra.mxu0 %v1769_v17  ;;  %v739_v17 = vld [vmem:[%s2379_s6 + $0x18] sm:$0xff] }
  0x75   :  { %1771 = vmatprep.subr.bf16.mxu0 %v2089_v11  ;;  %v1808_v18 = vpack.c.bf16 %v739_v17, %v738_v16  ;;  %v844_v16 = vld [vmem:[#allocation5 + $0xd8] sm:$0xff] }
  0x76   :  { %1794 = vmatpush3.bf16.msra.mxu1 %v1793_v42 }
  0x77   :  { %1795 = vmatprep.subr.bf16.mxu1 %v2089_v11 }
  0x78   :  { %1773 = vmatpush3.bf16.msra.mxu0 %v1772_v20  ;;  %v741_v20 = vld [vmem:[%s2379_s6 + $0x28] sm:$0xff] }
  0x79   :  { %1774 = vmatprep.subr.bf16.mxu0 %v2089_v11  ;;  %v1811_v21 = vpack.c.bf16 %v741_v20, %v740_v19  ;;  %v835_v19 = vld [vmem:[#allocation5 + $0x90] sm:$0xff] }
  0x7a   :  { %1797 = vmatpush3.bf16.msra.mxu1 %v1796_v63  ;;  %v1838_v63 = vpack.c.bf16 %v905_v62, %v897_v61  ;;  %v843_v20 = vld [vmem:[#allocation5 + $0xd0] sm:$0xff]  ;;  %v830_v61 = vld [vmem:[#allocation5 + $0x68] sm:$0xff]  ;;  %v824_v62 = vld [vmem:[#allocation5 + $0x38] sm:$0xff] }
  0x7b   :  { %1798 = vmatprep.subr.bf16.mxu1 %v2089_v11 }
  0x7c   :  { %1776 = vmatpush3.bf16.msra.mxu0 %v1775_v23  ;;  %v743_v23 = vld [vmem:[%s2379_s6 + $0x38] sm:$0xff]  ;;  %s2092_s6 = smov [#allocation7]  }
  0x7d   :  { %1777 = vmatprep.subr.bf16.mxu0 %v2089_v11  ;;  %v1814_v24 = vpack.c.bf16 %v743_v23, %v742_v22  ;;  %v852_v22 = vld [vmem:[#allocation5 + $0x118] sm:$0xff]  ;;  %s1334_s15 = sshll.u32 %s2092_s6, 4  ;;  %s1335_s15 = int_to_ptr.vmem [resolvable:$true] %s1334_s15 }
  0x7e   :  { %v860_v23 = vld [vmem:[#allocation5 + $0x158] sm:$0xff]  ;;  %s2031_s16 = scalar_lea.vmem %s1335_s15, 128  ;;  %p2036_p3 = scmp.lt.s32.totalorder %s1335_s15, %s1335_s15 }
  0x7f   :  { %p2032_p2 = scmp.ne.s32.totalorder %s1335_s15, %s2031_s16  ;;  %p2037_p4 = scmp.lt.s32.totalorder %s2031_s16, %s2031_s16 }
  0x80   :  { %1779 = vmatpush3.bf16.msra.mxu0 %v1778_v26  ;;  %v826_v26 = vld [vmem:[#allocation5 + $0x48] sm:$0xff] }
  0x81   :  { %1780 = vmatprep.subr.bf16.mxu0 %v2089_v11  ;;  %v1816_v28 = vpack.c.bf16 %v826_v26, %v818_v25  ;;  %v1854_v25 = vpack.c.bf16 %v843_v20, %v835_v19  ;;  %v1856_v26 = vpack.c.bf16 %v860_v23, %v852_v22  ;;  %v854_v19 = vld [vmem:[#allocation5 + $0x128] sm:$0xff]  ;;  %v856_v22 = vld [vmem:[#allocation5 + $0x138] sm:$0xff]  ;;  %p2038_p5 = por %p2037_p4, %p2036_p3 }
  0x82   :  { %v864_v23 = vld [vmem:[#allocation5 + $0x178] sm:$0xff] }
  0x83   :  { %p2039_p6 = pnand %p2038_p5, %p2032_p2 }
  0x84   :  { %1782 = vmatpush3.bf16.msra.mxu0 %v1781_v29  ;;  %v828_v29 = vld [vmem:[#allocation5 + $0x58] sm:$0xff] }
  0x85   :  { %1783 = vmatprep.subr.bf16.mxu0 %v2089_v11 }
  0x88   :  { %1785 = vmatpush3.bf16.msra.mxu0 %v1784_v32  ;;  %v1848_v32 = vpack.c.bf16 %v828_v29, %v820_v27  ;;  %v851_v27 = vld [vmem:[#allocation5 + $0x110] sm:$0xff]  ;;  %v868_v29 = vld [vmem:[#allocation5 + $0x198] sm:$0xff] }
  0x89   :  { %1817 = vmatprep.subr.bf16.mxu0 %v1816_v28  ;;  %v859_v28 = vld [vmem:[#allocation5 + $0x150] sm:$0xff] }
  0x8a   :  { %v1858_v31 = vpack.c.bf16 %v859_v28, %v851_v27  ;;  %v853_v27 = vld [vmem:[#allocation5 + $0x120] sm:$0xff] }
  0x8b   :  { %v861_v28 = vld [vmem:[#allocation5 + $0x160] sm:$0xff] }
 0x11e   :  { %v1402_v43 = vpop.f32.mrb[0].mxu0 }
 0x11f   :  { %v1403_v45 = vpop.f32.mrb[1].mxu0 }
 0x120   :  { %v1437_v46 = vpop.f32.mrb[0].mxu1  ;;  %v1404_v47 = vadd.f32 %v1403_v45, %v1402_v43  ;;  %v849_v43 = vld [vmem:[#allocation5 + $0x100] sm:$0xff] }
 0x121   :  { %v1438_v48 = vpop.f32.mrb[1].mxu1 }
 0x122   :  { %v1439_v49 = vadd.f32 %v1438_v48, %v1437_v46  ;;  %v274_v50 = vadd.f32 %v1404_v47, %v1358_v44  ;;  %v857_v44 = vld [vmem:[#allocation5 + $0x140] sm:$0xff]  ;;  %v866_v46 = vld [vmem:[#allocation5 + $0x188] sm:$0xff] }
 0x123   :  { %v1826_v45 = vpack.c.bf16 %v857_v44, %v849_v43  ;;  %v874_v47 = vld [vmem:[#allocation5 + $0x1c8] sm:$0xff] }
 0x124   :  { %v344_v51 = vadd.f32 %v1439_v49, %v274_v50  ;;  %v1828_v48 = vpack.c.bf16 %v874_v47, %v866_v46  ;;  %v865_v49 = vld [vmem:[#allocation5 + $0x180] sm:$0xff]  ;;  %v907_v46 = vld [vmem:[#allocation5 + $0x2d0] sm:$0xff]  ;;  %v916_v47 = vld [vmem:[#allocation5 + $0x318] sm:$0xff] }
 0x125   :  { %v873_v50 = vld [vmem:[#allocation5 + $0x1c0] sm:$0xff] }
 0x13e   :  { %v1472_v52 = vpop.f32.mrb[2].mxu0 }
 0x13f   :  { %v1473_v53 = vpop.f32.mrb[3].mxu0 }
 0x140   :  { %v1507_v54 = vpop.f32.mrb[2].mxu1  ;;  %v1474_v55 = vadd.f32 %v1473_v53, %v1472_v52  ;;  %v882_v52 = vld [vmem:[#allocation5 + $0x208] sm:$0xff] }
 0x141   :  { %v1508_v56 = vpop.f32.mrb[3].mxu1  ;;  %v890_v53 = vld [vmem:[#allocation5 + $0x248] sm:$0xff] }
 0x142   :  { %v1509_v57 = vadd.f32 %v1508_v56, %v1507_v54  ;;  %v414_v58 = vadd.f32 %v1474_v55, %v344_v51  ;;  %v1830_v51 = vpack.c.bf16 %v873_v50, %v865_v49  ;;  %v1832_v54 = vpack.c.bf16 %v890_v53, %v882_v52  ;;  %v881_v55 = vld [vmem:[#allocation5 + $0x200] sm:$0xff]  ;;  %v923_v52 = vld [vmem:[#allocation5 + $0x350] sm:$0xff]  ;;  %v932_v53 = vld [vmem:[#allocation5 + $0x398] sm:$0xff] }
 0x143   :  { %v889_v56 = vld [vmem:[#allocation5 + $0x240] sm:$0xff] }
 0x144   :  { %v484_v59 = vadd.f32 %v1509_v57, %v414_v58  ;;  %v1834_v57 = vpack.c.bf16 %v889_v56, %v881_v55  ;;  %v898_v58 = vld [vmem:[#allocation5 + $0x288] sm:$0xff] }
 0x146   :  { %v487_v60 = vmax.f32 %v484_v59, 0.0  ;;  %v906_v59 = vld [vmem:[#allocation5 + $0x2c8] sm:$0xff] }
 0x148   :  { %1583 = vmatmul.mubr.f32.vlgmr.msra.gmra.mrb[4].mxu0 %v487_v60  ;;  %v1836_v60 = vpack.c.bf16 %v906_v59, %v898_v58  ;;  %v939_v58 = vld [vmem:[#allocation5 + $0x3d0] sm:$0xff] }
 0x149   :  { %1051 = vmatprep.mubr.f32.mxu0 %v2091_v33  ;;  %1819 = vmatpush1.bf16.msra.mxu0 %v1818_v34  ;;  %v867_v34 = vld [vmem:[#allocation5 + $0x190] sm:$0xff] }
 0x14a   :  { %1821 = vmatprep.subr.bf16.mxu0 %v1820_v37  ;;  %v892_v37 = vld [vmem:[#allocation5 + $0x258] sm:$0xff]  ;;  %v1862_v38 = vpack.c.bf16 %v875_v35, %v867_v34  ;;  %v870_v34 = vld [vmem:[#allocation5 + $0x1a8] sm:$0xff] }
 0x14b   :  { %v1864_v39 = vpack.c.bf16 %v892_v37, %v884_v36  ;;  %v878_v35 = vld [vmem:[#allocation5 + $0x1e8] sm:$0xff]  ;;  %v872_v36 = vld [vmem:[#allocation5 + $0x1b8] sm:$0xff] }
 0x14c   :  { %v880_v37 = vld [vmem:[#allocation5 + $0x1f8] sm:$0xff] }
 0x14d   :  { %1823 = vmatpush1.bf16.msra.mxu0 %v1822_v40  ;;  %v883_v40 = vld [vmem:[#allocation5 + $0x210] sm:$0xff] }
 0x21b   :  { %v570_v2 = vpop.f32.mrb[4].mxu0 }
 0x21c   :  { %v574_v4 = vmax.f32 %v570_v2, 0.0  ;;  %v1584_v5 = vpop.f32.mrb[5].mxu0  ;;  %v1840_v2 = vpack.c.bf16 %v922_v1, %v914_v0  ;;  %v832_v0 = vld [vmem:[#allocation5 + $0x78] sm:$0xff] }
 0x21d   :  { %v1912_v1 = vpack.c.bf16 %v832_v0, %v824_v62  ;;  %v901_v62 = vld [vmem:[#allocation5 + $0x2a0] sm:$0xff] }
 0x21e   :  { %1602 = vmatmul.mubr.msk.f32.vlgmr.msra.gmra.mrb[4].mxu1 %vm583_vm1, %v574_v4  ;;  %v921_v4 = vld [vmem:[#allocation5 + $0x340] sm:$0xff] }
 0x21f   :  { %1800 = vmatpush3.bf16.msra.mxu1 %v1799_v3  ;;  %1612 = vmatprep.mubr.msk.f32.mxu1 %vm2090_vm0, %v2091_v33  ;;  %v913_v3 = vld [vmem:[#allocation5 + $0x300] sm:$0xff] }
 0x220   :  { %1801 = vmatprep.subr.bf16.mxu1 %v2089_v11  ;;  %v1842_v5 = vpack.c.bf16 %v921_v4, %v913_v3  ;;  %v829_v3 = vld [vmem:[#allocation5 + $0x60] sm:$0xff]  ;;  %v823_v4 = vld [vmem:[#allocation5 + $0x30] sm:$0xff] }
 0x223   :  { %1803 = vmatpush3.bf16.msra.mxu1 %v1802_v8  ;;  %v1844_v8 = vpack.c.bf16 %v938_v7, %v930_v6  ;;  %v838_v6 = vld [vmem:[#allocation5 + $0xa8] sm:$0xff] }
 0x224   :  { %1804 = vmatprep.subr.bf16.mxu1 %v2089_v11  ;;  %v846_v7 = vld [vmem:[#allocation5 + $0xe8] sm:$0xff] }
 0x2f1   :  { %v653_v12 = vpop.f32.mrb[4].mxu1 }
 0x2f2   :  { %v657_v14 = vmax.f32 %v653_v12, 0.0  ;;  %v1603_v15 = vpop.f32.mrb[5].mxu1  ;;  %v1846_v12 = vpack.c.bf16 %v937_v10, %v929_v9  ;;  %v848_v9 = vld [vmem:[#allocation5 + $0xf8] sm:$0xff] }
 0x2f3   :  { %v836_v15 = vld [vmem:[#allocation5 + $0x98] sm:$0xff] }
 0x2f4   :  { %1613 = vmatmul.mubr.msk.f32.vlgmr.msra.gmra.mrb[6].mxu1 %vm662_vm2, %v657_v14  ;;  %1319 = vst.msk [vmem:[#allocation7] sm:$0xff] %vm662_vm2, %v657_v14  ;;  %v827_v14 = vld [vmem:[#allocation5 + $0x50] sm:$0xff] }
 0x2f5   :  { %1806 = vmatpush3.bf16.msra.mxu1 %v1805_v13  ;;  %1631 = vmatprep.mubr.msk.f32.mxu1 %vm2090_vm0, %v2091_v33  ;;  %v819_v13 = vld [vmem:[#allocation5 + $0x10] sm:$0xff] }
 0x2f6   :  { %1807 = vmatprep.subr.bf16.mxu1 %v2089_v11  ;;  %v1850_v17 = vpack.c.bf16 %v827_v14, %v819_v13  ;;  %v837_v13 = vld [vmem:[#allocation5 + $0xa0] sm:$0xff] }
 0x2f7   :  { %v845_v14 = vld [vmem:[#allocation5 + $0xe0] sm:$0xff] }
 0x2f9   :  { %1809 = vmatpush3.bf16.msra.mxu1 %v1808_v18  ;;  %v1852_v18 = vpack.c.bf16 %v844_v16, %v836_v15  ;;  %v1884_v15 = vpack.c.bf16 %v846_v7, %v838_v6  ;;  %v920_v6 = vld [vmem:[#allocation5 + $0x338] sm:$0xff] }
 0x2fa   :  { %1810 = vmatprep.subr.bf16.mxu1 %v2089_v11  ;;  %v928_v7 = vld [vmem:[#allocation5 + $0x378] sm:$0xff] }
 0x2fd   :  { %1812 = vmatpush3.bf16.msra.mxu1 %v1811_v21 }
 0x2fe   :  { %1813 = vmatprep.subr.bf16.mxu1 %v2089_v11  ;;  %v850_v11 = vld [vmem:[#allocation5 + $0x108] sm:$0xff] }
 0x2ff   :  { %v1824_v42 = vpack.c.bf16 %v858_v41, %v850_v11  ;;  %v891_v11 = vld [vmem:[#allocation5 + $0x250] sm:$0xff]  ;;  %v900_v41 = vld [vmem:[#allocation5 + $0x298] sm:$0xff] }
 0x300   :  { %v1866_v43 = vpack.c.bf16 %v891_v11, %v883_v40  ;;  %v869_v40 = vld [vmem:[#allocation5 + $0x1a0] sm:$0xff] }
 0x301   :  { %1815 = vmatpush3.bf16.msra.mxu1 %v1814_v24  ;;  %1825 = vmatprep.subr.bf16.mxu0 %v1824_v42  ;;  %v908_v42 = vld [vmem:[#allocation5 + $0x2d8] sm:$0xff]  ;;  %v877_v11 = vld [vmem:[#allocation5 + $0x1e0] sm:$0xff] }
 0x302   :  { %1849 = vmatprep.subr.bf16.mxu1 %v1848_v32  ;;  %1827 = vmatpush1.bf16.msra.mxu0 %v1826_v45  ;;  %v1860_v32 = vpack.c.bf16 %v876_v30, %v868_v29  ;;  %v1868_v44 = vpack.c.bf16 %v908_v42, %v900_v41  ;;  %v899_v45 = vld [vmem:[#allocation5 + $0x290] sm:$0xff]  ;;  %v1920_v30 = vpack.c.bf16 %v864_v23, %v856_v22 }
 0x303   :  { %1829 = vmatprep.subr.bf16.mxu0 %v1828_v48  ;;  %v924_v48 = vld [vmem:[#allocation5 + $0x358] sm:$0xff]  ;;  %v1870_v49 = vpack.c.bf16 %v907_v46, %v899_v45  ;;  %v1892_v41 = vpack.c.bf16 %v878_v35, %v870_v34  ;;  %v1924_v42 = vpack.c.bf16 %v880_v37, %v872_v36  ;;  %v886_v45 = vld [vmem:[#allocation5 + $0x228] sm:$0xff] }
 0x304   :  { %v1872_v50 = vpack.c.bf16 %v924_v48, %v916_v47  ;;  %v894_v46 = vld [vmem:[#allocation5 + $0x268] sm:$0xff]  ;;  %v888_v47 = vld [vmem:[#allocation5 + $0x238] sm:$0xff] }
 0x305   :  { %v896_v48 = vld [vmem:[#allocation5 + $0x278] sm:$0xff] }
 0x306   :  { %1831 = vmatpush1.bf16.msra.mxu0 %v1830_v51  ;;  %v915_v51 = vld [vmem:[#allocation5 + $0x310] sm:$0xff] }
 0x307   :  { %1833 = vmatprep.subr.bf16.mxu0 %v1832_v54  ;;  %v940_v54 = vld [vmem:[#allocation5 + $0x3d8] sm:$0xff]  ;;  %v1874_v55 = vpack.c.bf16 %v923_v52, %v915_v51  ;;  %v893_v51 = vld [vmem:[#allocation5 + $0x260] sm:$0xff]  ;;  %v1896_v52 = vpack.c.bf16 %v894_v46, %v886_v45 }
 0x308   :  { %v1876_v56 = vpack.c.bf16 %v940_v54, %v932_v53  ;;  %v1928_v53 = vpack.c.bf16 %v896_v48, %v888_v47  ;;  %v887_v54 = vld [vmem:[#allocation5 + $0x230] sm:$0xff] }
 0x30a   :  { %1835 = vmatpush1.bf16.msra.mxu0 %v1834_v57  ;;  %v931_v57 = vld [vmem:[#allocation5 + $0x390] sm:$0xff] }
 0x30b   :  { %1837 = vmatprep.subr.bf16.mxu0 %v1836_v60  ;;  %v1878_v59 = vpack.c.bf16 %v939_v58, %v931_v57  ;;  %v822_v60 = vld [vmem:[#allocation5 + $0x28] sm:$0xff]  ;;  %v904_v58 = vld [vmem:[#allocation5 + $0x2b8] sm:$0xff] }
 0x30c   :  { %v910_v57 = vld [vmem:[#allocation5 + $0x2e8] sm:$0xff] }
 0x30e   :  { %1839 = vmatpush1.bf16.msra.mxu0 %v1838_v63  ;;  %v1880_v63 = vpack.c.bf16 %v830_v61, %v822_v60 }
 0x30f   :  { %1841 = vmatprep.subr.bf16.mxu0 %v1840_v2  ;;  %v821_v2 = vld [vmem:[#allocation5 + $0x20] sm:$0xff] }
 0x310   :  { %v1882_v10 = vpack.c.bf16 %v829_v3, %v821_v2  ;;  %v903_v2 = vld [vmem:[#allocation5 + $0x2b0] sm:$0xff] }
 0x311   :  { %v911_v3 = vld [vmem:[#allocation5 + $0x2f0] sm:$0xff] }
 0x312   :  { %1843 = vmatpush1.bf16.msra.mxu0 %v1842_v5  ;;  %v831_v5 = vld [vmem:[#allocation5 + $0x70] sm:$0xff] }
 0x313   :  { %1845 = vmatprep.subr.bf16.mxu0 %v1844_v8  ;;  %v840_v8 = vld [vmem:[#allocation5 + $0xb8] sm:$0xff] }
 0x314   :  { %v1916_v16 = vpack.c.bf16 %v848_v9, %v840_v8  ;;  %v1934_v9 = vpack.c.bf16 %v911_v3, %v903_v2 }
 0x316   :  { %1847 = vmatpush1.bf16.msra.mxu0 %v1846_v12  ;;  %v1914_v12 = vpack.c.bf16 %v831_v5, %v823_v4  ;;  %v918_v4 = vld [vmem:[#allocation5 + $0x328] sm:$0xff] }
 0x317   :  { %1881 = vmatprep.subr.bf16.mxu0 %v1880_v63  ;;  %v909_v63 = vld [vmem:[#allocation5 + $0x2e0] sm:$0xff]  ;;  %v926_v5 = vld [vmem:[#allocation5 + $0x368] sm:$0xff] }
 0x318   :  { %v1902_v8 = vpack.c.bf16 %v909_v63, %v901_v62 }
 0x3c7   :  { %v732_v21 = vpop.f32.mrb[6].mxu1 }
 0x3c8   :  { %v1614_v24 = vpop.f32.mrb[7].mxu1  ;;  %1632 = vmatmul.mubr.msk.f32.vlgmr.msra.gmra.mrb[8].mxu1 %vm583_vm1, %v732_v21  ;;  %v862_v21 = vld [vmem:[#allocation5 + $0x168] sm:$0xff] }
 0x3c9   :  { %1851 = vmatpush1.bf16.msra.mxu1 %v1850_v17  ;;  %1122 = vmatprep.mubr.f32.mxu1 %v2091_v33  ;;  %v839_v17 = vld [vmem:[#allocation5 + $0xb0] sm:$0xff]  ;;  %v1888_v29 = vpack.c.bf16 %v862_v21, %v854_v19  ;;  %v936_v19 = vld [vmem:[#allocation5 + $0x3b8] sm:$0xff] }
 0x3ca   :  { %1853 = vmatprep.subr.bf16.mxu1 %v1852_v18  ;;  %v847_v18 = vld [vmem:[#allocation5 + $0xf0] sm:$0xff]  ;;  %v944_v21 = vld [vmem:[#allocation5 + $0x3f8] sm:$0xff] }
 0x3cd   :  { %1855 = vmatpush1.bf16.msra.mxu1 %v1854_v25  ;;  %v1886_v25 = vpack.c.bf16 %v845_v14, %v837_v13  ;;  %v1904_v13 = vpack.c.bf16 %v926_v5, %v918_v4  ;;  %v1936_v14 = vpack.c.bf16 %v928_v7, %v920_v6 }
 0x3ce   :  { %1857 = vmatprep.subr.bf16.mxu1 %v1856_v26  ;;  %v1918_v26 = vpack.c.bf16 %v847_v18, %v839_v17  ;;  %v934_v17 = vld [vmem:[#allocation5 + $0x3a8] sm:$0xff] }
 0x3cf   :  { %v942_v18 = vld [vmem:[#allocation5 + $0x3e8] sm:$0xff] }
 0x3d1   :  { %1859 = vmatpush1.bf16.msra.mxu1 %v1858_v31  ;;  %v855_v31 = vld [vmem:[#allocation5 + $0x130] sm:$0xff] }
 0x3d2   :  { %1861 = vmatprep.subr.bf16.mxu1 %v1860_v32  ;;  %v863_v32 = vld [vmem:[#allocation5 + $0x170] sm:$0xff] }
 0x3d5   :  { %1863 = vmatpush1.bf16.msra.mxu1 %v1862_v38  ;;  %v1890_v38 = vpack.c.bf16 %v861_v28, %v853_v27  ;;  %v941_v27 = vld [vmem:[#allocation5 + $0x3e0] sm:$0xff]  ;;  %v935_v28 = vld [vmem:[#allocation5 + $0x3b0] sm:$0xff] }
 0x3d6   :  { %1865 = vmatprep.subr.bf16.mxu1 %v1864_v39  ;;  %v1922_v39 = vpack.c.bf16 %v863_v32, %v855_v31 }
 0x3d9   :  { %1867 = vmatpush1.bf16.msra.mxu1 %v1866_v43  ;;  %v871_v43 = vld [vmem:[#allocation5 + $0x1b0] sm:$0xff] }
 0x3da   :  { %1869 = vmatprep.subr.bf16.mxu1 %v1868_v44  ;;  %v879_v44 = vld [vmem:[#allocation5 + $0x1f0] sm:$0xff] }
 0x3dd   :  { %1871 = vmatpush1.bf16.msra.mxu1 %v1870_v49  ;;  %v1894_v49 = vpack.c.bf16 %v877_v11, %v869_v40 }
 0x3de   :  { %1873 = vmatprep.subr.bf16.mxu1 %v1872_v50  ;;  %v885_v50 = vld [vmem:[#allocation5 + $0x220] sm:$0xff] }
 0x3df   :  { %v1898_v60 = vpack.c.bf16 %v893_v51, %v885_v50 }
 0x3e1   :  { %1875 = vmatpush1.bf16.msra.mxu1 %v1874_v55  ;;  %v895_v55 = vld [vmem:[#allocation5 + $0x270] sm:$0xff] }
 0x3e2   :  { %1877 = vmatprep.subr.bf16.mxu1 %v1876_v56  ;;  %v902_v56 = vld [vmem:[#allocation5 + $0x2a8] sm:$0xff]  ;;  %v1930_v61 = vpack.c.bf16 %v895_v55, %v887_v54 }
 0x3e3   :  { %v1900_v0 = vpack.c.bf16 %v910_v57, %v902_v56 }
 0x3e5   :  { %1879 = vmatpush1.bf16.msra.mxu1 %v1878_v59  ;;  %v912_v59 = vld [vmem:[#allocation5 + $0x2f8] sm:$0xff] }
 0x3e6   :  { %1913 = vmatprep.subr.bf16.mxu1 %v1912_v1  ;;  %v1932_v1 = vpack.c.bf16 %v912_v59, %v904_v58 }
 0x49b   :  { %v2338_v20 = vpop.f32.mrb[8].mxu1 }
 0x49c   :  { %v1633_v24 = vpop.f32.mrb[9].mxu1  ;;  %1052 = vmatmul.mubr.f32.vlgmr.msra.gmra.mrb[6].mxu0 %v2338_v20  ;;  %1123 = vmatmul.mubr.f32.vlgmr.msra.gmra.mrb[10].mxu1 %v2338_v20 }
 0x49d   :  { %1883 = vmatpush1.bf16.msra.mxu0 %v1882_v10  ;;  %1915 = vmatpush1.bf16.msra.mxu1 %v1914_v12  ;;  %v917_v10 = vld [vmem:[#allocation5 + $0x320] sm:$0xff] }
 0x49e   :  { %1885 = vmatprep.subr.bf16.mxu0 %v1884_v15  ;;  %1917 = vmatprep.subr.bf16.mxu1 %v1916_v16  ;;  %v925_v12 = vld [vmem:[#allocation5 + $0x360] sm:$0xff]  ;;  %v919_v15 = vld [vmem:[#allocation5 + $0x330] sm:$0xff] }
 0x49f   :  { %1193 = vmatprep.mubr.f32.mxu0 %v2091_v33  ;;  %1264 = vmatprep.mubr.f32.mxu1 %v2091_v33  ;;  %v1926_v33 = vpack.c.bf16 %v879_v44, %v871_v43  ;;  %v927_v16 = vld [vmem:[#allocation5 + $0x370] sm:$0xff]  ;;  %v1906_v22 = vpack.c.bf16 %v925_v12, %v917_v10  ;;  %v933_v24 = vld [vmem:[#allocation5 + $0x3a0] sm:$0xff] }
 0x4a0   :  { %v1938_v23 = vpack.c.bf16 %v927_v16, %v919_v15 }
 0x4a1   :  { %1887 = vmatpush1.bf16.msra.mxu0 %v1886_v25  ;;  %1919 = vmatpush1.bf16.msra.mxu1 %v1918_v26  ;;  %v1908_v25 = vpack.c.bf16 %v942_v18, %v934_v17  ;;  %v1940_v26 = vpack.c.bf16 %v944_v21, %v936_v19 }
 0x4a2   :  { %1889 = vmatprep.subr.bf16.mxu0 %v1888_v29  ;;  %1921 = vmatprep.subr.bf16.mxu1 %v1920_v30  ;;  %v943_v29 = vld [vmem:[#allocation5 + $0x3f0] sm:$0xff]  ;;  %v1910_v30 = vpack.c.bf16 %v941_v27, %v933_v24 }
 0x4a3   :  { %v1942_v31 = vpack.c.bf16 %v943_v29, %v935_v28 }
 0x4a5   :  { %1891 = vmatpush1.bf16.msra.mxu0 %v1890_v38  ;;  %1923 = vmatpush1.bf16.msra.mxu1 %v1922_v39 }
 0x4a6   :  { %1893 = vmatprep.subr.bf16.mxu0 %v1892_v41  ;;  %1925 = vmatprep.subr.bf16.mxu1 %v1924_v42 }
 0x4a9   :  { %1895 = vmatpush1.bf16.msra.mxu0 %v1894_v49  ;;  %1927 = vmatpush1.bf16.msra.mxu1 %v1926_v33 }
 0x4aa   :  { %1897 = vmatprep.subr.bf16.mxu0 %v1896_v52  ;;  %1929 = vmatprep.subr.bf16.mxu1 %v1928_v53 }
 0x4ad   :  { %1899 = vmatpush1.bf16.msra.mxu0 %v1898_v60  ;;  %1931 = vmatpush1.bf16.msra.mxu1 %v1930_v61 }
 0x4ae   :  { %1901 = vmatprep.subr.bf16.mxu0 %v1900_v0  ;;  %1933 = vmatprep.subr.bf16.mxu1 %v1932_v1 }
 0x4b1   :  { %1903 = vmatpush1.bf16.msra.mxu0 %v1902_v8  ;;  %1935 = vmatpush1.bf16.msra.mxu1 %v1934_v9 }
 0x4b2   :  { %1905 = vmatprep.subr.bf16.mxu0 %v1904_v13  ;;  %1937 = vmatprep.subr.bf16.mxu1 %v1936_v14 }
 0x4b5   :  { %1907 = vmatpush1.bf16.msra.mxu0 %v1906_v22  ;;  %1939 = vmatpush1.bf16.msra.mxu1 %v1938_v23 }
 0x4b6   :  { %1909 = vmatprep.subr.bf16.mxu0 %v1908_v25  ;;  %1941 = vmatprep.subr.bf16.mxu1 %v1940_v26 }
 0x4b9   :  { %1911 = vmatpush1.bf16.msra.mxu0 %v1910_v30  ;;  %1943 = vmatpush1.bf16.msra.mxu1 %v1942_v31 }
 0x4bc   :  { %1194 = vmatmul.mubr.f32.vlgmr.msra.gmra.mrb[8].mxu0 %v2338_v20  ;;  %1265 = vmatmul.mubr.f32.vlgmr.msra.gmra.mrb[12].mxu1 %v2338_v20 }
 0x4bd   :  { %2042 = shalt.err (!%p2039_p6)
}
 0x4be   :  { %s2043_s14 = scalar_lea.hbm %s2382_s9, 128 }
 0x4bf   :  { %p2044_p7 = scmp.ne.s32.totalorder %s2382_s9, %s2043_s14  ;;  %p2047_p8 = scmp.lt.u32.totalorder %s2043_s14, %s2382_s9 }
 0x4c1   :  { %p2049_p9 = pnand %p2047_p8, %p2044_p7 }
 0x4c3   :  { %2052 = shalt.err (!%p2049_p9)
}
 0x4c4   :  { %1337 = dma.vmem_to_hbm [thread:$0]  %s1335_s15, 128, %s2382_s9, [#allocation4]   ;;  %v947_v20 = vlaneseq  ;;  %v945_v36 = vld [vmem:[%s2381_s8] sm:$0xff] }
 0x4c5   :  { %s2093_s8 = smov [#allocation8]  }
 0x4c6   :  { %v948_v32 = vshrl.u32 %v947_v20, 7  ;;  %s1344_s9 = sshll.u32 %s2093_s8, 4  ;;  %s1345_s9 = int_to_ptr.vmem [resolvable:$true] %s1344_s9 }
 0x4c7   :  { %s2053_s23 = scalar_lea.vmem %s1345_s9, 1024  ;;  %p2058_p11 = scmp.lt.s32.totalorder %s1345_s9, %s1345_s9 }
 0x4c8   :  { %v949_v34 = vsub.s32 0, %v948_v32  ;;  %v957_v35 = vsub.s32 2, %v948_v32  ;;  %v953_v37 = vsub.s32 1, %v948_v32  ;;  %v961_v38 = vsub.s32 3, %v948_v32  ;;  %p2054_p10 = scmp.ne.s32.totalorder %s1345_s9, %s2053_s23  ;;  %p2059_p12 = scmp.lt.s32.totalorder %s2053_s23, %s2053_s23 }
 0x4c9   :  { %v965_v61 = vsub.s32 4, %v948_v32  ;;  %v973_v62 = vsub.s32 6, %v948_v32  ;;  %v969_v63 = vsub.s32 5, %v948_v32  ;;  %v977_v0 = vsub.s32 7, %v948_v32 }
 0x4ca   :  { %v950_v39 = vrot.slane %v945_v36, %v949_v34  ;;  %v958_v40 = vrot.slane %v945_v36, %v957_v35  ;;  %v954_v11 = vrot.slane %v945_v36, %v953_v37  ;;  %v962_v41 = vrot.slane %v945_v36, %v961_v38  ;;  %p2060_p13 = por %p2059_p12, %p2058_p11 }
 0x4cb   :  { %v966_v3 = vrot.slane %v945_v36, %v965_v61  ;;  %v974_v4 = vrot.slane %v945_v36, %v973_v62  ;;  %v970_v6 = vrot.slane %v945_v36, %v969_v63  ;;  %v978_v7 = vrot.slane %v945_v36, %v977_v0 }
 0x4cc   :  { %p2061_p0 = pnand %p2060_p13, %p2054_p10 }
 0x56f   :  { %v1053_v42 = vpop.f32.mrb[6].mxu0  ;;  %v1124_v43 = vpop.f32.mrb[10].mxu1 }
 0x570   :  { %v1054_v44 = vadd.f32 %v1053_v42, %v950_v39  ;;  %v1125_v45 = vadd.f32 %v1124_v43, %v958_v40  ;;  %v1055_v46 = vpop.f32.mrb[7].mxu0  ;;  %v1126_v47 = vpop.f32.mrb[11].mxu1 }
 0x571   :  { %v1056_v48 = vadd.f32 %v1055_v46, %v954_v11  ;;  %v1127_v49 = vadd.f32 %v1126_v47, %v962_v41 }
 0x572   :  { %v1362_v33 = vmul.f32 -1.442695, %v1054_v44  ;;  %v1364_v50 = vmul.f32 -1.442695, %v1125_v45 }
 0x573   :  { %v1363_v51 = vmul.f32 -1.442695, %v1056_v48  ;;  %v1365_v52 = vmul.f32 -1.442695, %v1127_v49 }
 0x574   :  { %1955 = vpow2.f32 %v1362_v33 }
 0x575   :  { %1957 = vpow2.f32 %v1364_v50 }
 0x576   :  { %1959 = vpow2.f32 %v1363_v51 }
 0x577   :  { %1961 = vpow2.f32 %v1365_v52 }
 0x57e   :  { %v1956_v53 = vpop.eup %1955 }
 0x57f   :  { %v1958_v54 = vpop.eup %1957  ;;  %v1295_v55 = vadd.f32 1.0, %v1956_v53 }
 0x580   :  { %v1960_v56 = vpop.eup %1959  ;;  %v1297_v57 = vadd.f32 1.0, %v1958_v54 }
 0x581   :  { %v1962_v58 = vpop.eup %1961  ;;  %1963 = vrcp.f32 %v1295_v55  ;;  %v1296_v59 = vadd.f32 1.0, %v1960_v56 }
 0x582   :  { %1965 = vrcp.f32 %v1297_v57  ;;  %v1298_v60 = vadd.f32 1.0, %v1962_v58 }
 0x583   :  { %1967 = vrcp.f32 %v1296_v59 }
 0x584   :  { %1969 = vrcp.f32 %v1298_v60 }
 0x58b   :  { %v1964_v1 = vpop.eup %1963 }
 0x58c   :  { %v1966_v2 = vpop.eup %1965  ;;  %1320 = vst [vmem:[#allocation8] sm:$0xff] %v1964_v1 }
 0x58d   :  { %v1968_v5 = vpop.eup %1967  ;;  %1322 = vst [vmem:[#allocation8 + $0x10] sm:$0xff] %v1966_v2 }
 0x58e   :  { %v1970_v8 = vpop.eup %1969  ;;  %1321 = vst [vmem:[#allocation8 + $0x8] sm:$0xff] %v1968_v5 }
 0x58f   :  { %1323 = vst [vmem:[#allocation8 + $0x18] sm:$0xff] %v1970_v8  ;;  %v1195_v9 = vpop.f32.mrb[8].mxu0  ;;  %v1266_v10 = vpop.f32.mrb[12].mxu1 }
 0x590   :  { %v1196_v12 = vadd.f32 %v1195_v9, %v966_v3  ;;  %v1267_v13 = vadd.f32 %v1266_v10, %v974_v4  ;;  %v1197_v14 = vpop.f32.mrb[9].mxu0  ;;  %v1268_v15 = vpop.f32.mrb[13].mxu1 }
 0x591   :  { %v1198_v16 = vadd.f32 %v1197_v14, %v970_v6  ;;  %v1269_v17 = vadd.f32 %v1268_v15, %v978_v7 }
 0x592   :  { %v1366_v18 = vmul.f32 -1.442695, %v1196_v12  ;;  %v1368_v19 = vmul.f32 -1.442695, %v1267_v13 }
 0x593   :  { %v1367_v21 = vmul.f32 -1.442695, %v1198_v16  ;;  %v1369_v22 = vmul.f32 -1.442695, %v1269_v17 }
 0x594   :  { %1971 = vpow2.f32 %v1366_v18 }
 0x595   :  { %1973 = vpow2.f32 %v1368_v19 }
 0x596   :  { %1975 = vpow2.f32 %v1367_v21 }
 0x597   :  { %1977 = vpow2.f32 %v1369_v22 }
 0x59e   :  { %v1972_v23 = vpop.eup %1971 }
 0x59f   :  { %v1974_v24 = vpop.eup %1973  ;;  %v1299_v25 = vadd.f32 1.0, %v1972_v23 }
 0x5a0   :  { %v1976_v26 = vpop.eup %1975  ;;  %v1301_v27 = vadd.f32 1.0, %v1974_v24 }
 0x5a1   :  { %v1978_v28 = vpop.eup %1977  ;;  %1979 = vrcp.f32 %v1299_v25  ;;  %v1300_v29 = vadd.f32 1.0, %v1976_v26 }
 0x5a2   :  { %1981 = vrcp.f32 %v1301_v27  ;;  %v1302_v30 = vadd.f32 1.0, %v1978_v28 }
 0x5a3   :  { %1983 = vrcp.f32 %v1300_v29 }
 0x5a4   :  { %1985 = vrcp.f32 %v1302_v30 }
 0x5ab   :  { %v1980_v31 = vpop.eup %1979 }
 0x5ac   :  { %v1982_v20 = vpop.eup %1981  ;;  %1324 = vst [vmem:[#allocation8 + $0x20] sm:$0xff] %v1980_v31 }
 0x5ad   :  { %v1984_v32 = vpop.eup %1983  ;;  %1326 = vst [vmem:[#allocation8 + $0x30] sm:$0xff] %v1982_v20 }
 0x5ae   :  { %v1986_v34 = vpop.eup %1985  ;;  %1325 = vst [vmem:[#allocation8 + $0x28] sm:$0xff] %v1984_v32 }
 0x5af   :  { %1327 = vst [vmem:[#allocation8 + $0x38] sm:$0xff] %v1986_v34 }
 0x5b0   :  { %2064 = shalt.err (!%p2061_p0)
}
 0x5b1   :  { %s2065_s3 = scalar_lea.hbm %s2383_s10, 1024 }
 0x5b2   :  { %p2066_p1 = scmp.ne.s32.totalorder %s2383_s10, %s2065_s3  ;;  %p2069_p2 = scmp.lt.u32.totalorder %s2065_s3, %s2383_s10 }
 0x5b4   :  { %p2071_p3 = pnand %p2069_p2, %p2066_p1 }
 0x5b6   :  { %2074 = shalt.err (!%p2071_p3)
}
 0x5b7   :  { %1347 = dma.vmem_to_hbm [thread:$0]  %s1345_s9, 1024, %s2383_s10, [#allocation9]  }
 0x5b8   :  { %2079 = dma.done.wait [#allocation4], 128  }
 0x5b9   :  { %2080 = vsyncadd [#allocation4], 4294967168 }
 0x5ba   :  { %2081 = dma.done.wait [#allocation9], 1024  }
 0x5bb   :  { %2082 = vsyncadd [#allocation9], 4294966272 }
 0x5bc   :  { %1354 = vsyncpa [#allocation3], 1 }
 0x5bd   :  { %1355 = vsyncpa [#allocation6], 1 }
 0x5be   :  { %1356 = vsyncpa [#allocation4], 1 }
 0x5bf   :  { %1357 = vsyncpa [#allocation9], 1 }

</bundles_post_ra>
